<compile_context>
chip_gen: v5e
topology: v5e:2x2
jax: 0.10.0
libtpu: 0.0.40
codegen_flags: <defaults>
</compile_context>

<pallas_src>
import functools
import math

import jax
import jax.numpy as jnp
from jax.experimental import pallas as pl
from jax.experimental.pallas import tpu as pltpu


def _make_block_kernel(batch: int, seq: int, n_embed: int,
                       num_heads: int, head_size: int):
    eps = 1e-5
    neg_big = -1e30  # finite mask sentinel: avoids inf-inf -> NaN hazards
    B, T, C = batch, seq, n_embed
    nh, hs = num_heads, head_size

    def kernel(x_ref,
               wqkv_ref, wo_ref, bo_ref,
               g1_ref, b1_ref, g2_ref, b2_ref,
               w1_ref, fb1_ref, w2_ref, fb2_ref,
               o_ref):
        # x is presented 2-D (B*T, C): one lane-dense slab, no 3-D relayouts.
        x = x_ref[...].astype(jnp.float32)                        # (B*T, C)

        def layer_norm(h, g, b):
            mu = jnp.mean(h, axis=-1, keepdims=True)
            var = jnp.mean((h - mu) ** 2, axis=-1, keepdims=True)
            return (h - mu) * jax.lax.rsqrt(var + eps) * g + b

        # ---------------- self-attention branch ----------------
        h1 = layer_norm(x, g1_ref[...], b1_ref[...])              # f32
        hf = h1.astype(jnp.bfloat16)

        # Single fused QKV projection (lane-dense, 128-wide output).
        # Column layout: [ Q (nh*hs) | K (nh*hs) | V (nh*hs) | zero pad ].
        qkv = jnp.dot(hf, wqkv_ref[...],
                      preferred_element_type=jnp.float32)         # (B*T, 128)

        # Causal mask built once, hoisted out of the head loop.
        row = jax.lax.broadcasted_iota(jnp.int32, (T, T), 0)
        col = jax.lax.broadcasted_iota(jnp.int32, (T, T), 1)
        causal = (row >= col)[None, :, :]                         # (1, T, T)

        head_ctx = []
        for hd in range(nh):                                      # static unroll
            q = qkv[:, hd * hs:(hd + 1) * hs]                     # (B*T, hs)
            k = qkv[:, C + hd * hs:C + (hd + 1) * hs]
            v = qkv[:, 2 * C + hd * hs:2 * C + (hd + 1) * hs]
            qb = q.reshape(B, T, hs).astype(jnp.bfloat16)
            kb = k.reshape(B, T, hs).astype(jnp.bfloat16)
            vb = v.reshape(B, T, hs).astype(jnp.bfloat16)

            # scale already folded into the Q weight columns in the wrapper
            s = jnp.einsum('bqd,bkd->bqk', qb, kb,
                           preferred_element_type=jnp.float32)    # (B,T,T) f32
            s = jnp.where(causal, s, neg_big)
            s = s - jnp.max(s, axis=-1, keepdims=True)
            p = jnp.exp(s)
            denom = jnp.sum(p, axis=-1, keepdims=True)
            p = p * pl.reciprocal(denom, approx=True)             # EUP, not VALU
            # attention dropout is identity at inference

            oh = jnp.einsum('bqk,bkd->bqd', p.astype(jnp.bfloat16), vb,
                            preferred_element_type=jnp.float32)   # (B,T,hs)
            head_ctx.append(oh.reshape(B * T, hs))

        # Heads back into one lane-dense (B*T, C) context, then a SINGLE
        # output-projection matmul (instead of per-head dots + accumulation).
        ctx = jnp.concatenate(head_ctx, axis=-1).astype(jnp.bfloat16)
        attn = jnp.dot(ctx, wo_ref[...],
                       preferred_element_type=jnp.float32) + bo_ref[...]
        x1 = x + attn                                             # residual 1

        # ---------------- feed-forward branch ----------------
        h2 = layer_norm(x1, g2_ref[...], b2_ref[...])
        hid = jnp.dot(h2.astype(jnp.bfloat16), w1_ref[...],
                      preferred_element_type=jnp.float32) + fb1_ref[...]
        hid = jnp.maximum(hid, 0.0)                               # ReLU (f32)
        ff = jnp.dot(hid.astype(jnp.bfloat16), w2_ref[...],
                     preferred_element_type=jnp.float32) + fb2_ref[...]
        x2 = x1 + ff                                              # residual 2
        # ffwd dropout is identity at inference

        o_ref[...] = x2.astype(o_ref.dtype)

    return kernel


def init_block_params(key, n_embed: int):
    """Deterministic synthetic parameters (PyTorch-Linear-like scaling)."""
    C = n_embed
    H = 4 * n_embed
    ks = jax.random.split(key, 8)

    def lin(k, fan_in, fan_out):
        bound = 1.0 / math.sqrt(fan_in)
        return jax.random.uniform(k, (fan_in, fan_out), jnp.float32,
                                  -bound, bound)

    params = dict(
        wq=lin(ks[0], C, C), wk=lin(ks[1], C, C), wv=lin(ks[2], C, C),
        wo=lin(ks[3], C, C),
        bo=jax.random.uniform(ks[4], (1, C), jnp.float32,
                              -1 / math.sqrt(C), 1 / math.sqrt(C)),
        g1=jnp.ones((1, C), jnp.float32), b1=jnp.zeros((1, C), jnp.float32),
        g2=jnp.ones((1, C), jnp.float32), b2=jnp.zeros((1, C), jnp.float32),
        w1=lin(ks[5], C, H),
        fb1=jax.random.uniform(ks[6], (1, H), jnp.float32,
                               -1 / math.sqrt(C), 1 / math.sqrt(C)),
        w2=lin(ks[7], H, C),
        fb2=jnp.zeros((1, C), jnp.float32),
    )
    return params


@functools.partial(jax.jit, static_argnames=("num_heads", "head_size"))
def block_forward(x, params, *, num_heads: int, head_size: int):
    B, T, C = x.shape
    nh, hs = num_heads, head_size
    scale = hs ** -0.5

    bf = lambda a: a.astype(jnp.bfloat16)

    # Fused, lane-dense QKV weight: columns [Q | K | V], zero-padded to a
    # multiple of 128 lanes; 1/sqrt(hs) folded into the Q columns (in f32,
    # before the bf16 cast, so it costs nothing in-kernel).
    wqkv = jnp.concatenate(
        [params["wq"] * scale, params["wk"], params["wv"]], axis=1)   # (C, 3C)
    padded_cols = max(128, ((3 * C + 127) // 128) * 128)
    wqkv = jnp.pad(wqkv, ((0, 0), (0, padded_cols - 3 * C)))
    wqkv = bf(wqkv)

    wo = bf(params["wo"])   # (C, C)  — kept lane-dense, no per-head (hs) layout
    w1 = bf(params["w1"])   # (C, 4C)
    w2 = bf(params["w2"])   # (4C, C)

    # 2-D lane-dense kernel I/O; the (B,T,C)<->(B*T,C) reshapes live in XLA.
    x2d = x.reshape(B * T, C)

    kernel = _make_block_kernel(B, T, C, nh, hs)
    args = (x2d, wqkv, wo, params["bo"],
            params["g1"], params["b1"], params["g2"], params["b2"],
            w1, params["fb1"], w2, params["fb2"])

    vmem = pl.BlockSpec(memory_space=pltpu.MemorySpace.VMEM)
    out2d = pl.pallas_call(
        kernel,
        out_shape=jax.ShapeDtypeStruct((B * T, C), x.dtype),
        in_specs=[vmem] * len(args),
        out_specs=vmem,
        input_output_aliases={0: 0},   # out = x + ...  -> reuse x's HBM buffer
    )(*args)
    return out2d.reshape(B, T, C)


if __name__ == "__main__":
    # Small shapes consistent with the module:
    #   num_heads=4, head_size=8, n_embed=32, block_size(seq)=8, batch=2
    B, T, C = 2, 8, 32
    num_heads = 4
    head_size = C // num_heads

    key = jax.random.PRNGKey(0)
    kx, kp = jax.random.split(key)
    x = jax.random.normal(kx, (B, T, C), jnp.float32)
    params = init_block_params(kp, C)

    out = block_forward(x, params, num_heads=num_heads, head_size=head_size)
    jax.block_until_ready(out)
    assert out.shape == (B, T, C) and bool(jnp.all(jnp.isfinite(out)))
    print("KERNEL_OK")
</pallas_src>

<mosaic_0001>
module attributes {stable_mosaic.version = 11 : i64} {
  func.func @kernel(%arg0: memref<16x32xf32, #tpu.memory_space<vmem>>, %arg1: memref<32x128xbf16, #tpu.memory_space<vmem>>, %arg2: memref<32x32xbf16, #tpu.memory_space<vmem>>, %arg3: memref<1x32xf32, #tpu.memory_space<vmem>>, %arg4: memref<1x32xf32, #tpu.memory_space<vmem>>, %arg5: memref<1x32xf32, #tpu.memory_space<vmem>>, %arg6: memref<1x32xf32, #tpu.memory_space<vmem>>, %arg7: memref<1x32xf32, #tpu.memory_space<vmem>>, %arg8: memref<32x128xbf16, #tpu.memory_space<vmem>>, %arg9: memref<1x128xf32, #tpu.memory_space<vmem>>, %arg10: memref<128x32xbf16, #tpu.memory_space<vmem>>, %arg11: memref<1x32xf32, #tpu.memory_space<vmem>>, %arg12: memref<16x32xf32, #tpu.memory_space<vmem>>) attributes {dimension_semantics = [], scalar_prefetch = 0 : i64, scratch_operands = 0 : i64, tpu.core_type = #tpu.core_type<tc>} {
    %c0 = arith.constant 0 : index
    %c0_0 = arith.constant 0 : index
    %0 = vector.load %arg0[%c0, %c0_0] : memref<16x32xf32, #tpu.memory_space<vmem>>, vector<16x32xf32>
    %c0_1 = arith.constant 0 : index
    %c0_2 = arith.constant 0 : index
    %1 = vector.load %arg4[%c0_1, %c0_2] : memref<1x32xf32, #tpu.memory_space<vmem>>, vector<1x32xf32>
    %c0_3 = arith.constant 0 : index
    %c0_4 = arith.constant 0 : index
    %2 = vector.load %arg5[%c0_3, %c0_4] : memref<1x32xf32, #tpu.memory_space<vmem>>, vector<1x32xf32>
    %cst = arith.constant dense<0.000000e+00> : vector<16xf32>
    %3 = vector.multi_reduction <add>, %0, %cst [1] : vector<16x32xf32> to vector<16xf32>
    %4 = vector.shape_cast %3 : vector<16xf32> to vector<16x1xf32>
    %cst_5 = arith.constant 3.200000e+01 : f32
    %5 = vector.broadcast %cst_5 : f32 to vector<16x1xf32>
    %6 = arith.divf %4, %5 : vector<16x1xf32>
    %7 = vector.broadcast %6 : vector<16x1xf32> to vector<16x32xf32>
    %8 = arith.subf %0, %7 : vector<16x32xf32>
    %9 = arith.mulf %8, %8 : vector<16x32xf32>
    %cst_6 = arith.constant dense<0.000000e+00> : vector<16xf32>
    %10 = vector.multi_reduction <add>, %9, %cst_6 [1] : vector<16x32xf32> to vector<16xf32>
    %11 = vector.shape_cast %10 : vector<16xf32> to vector<16x1xf32>
    %cst_7 = arith.constant 3.200000e+01 : f32
    %12 = vector.broadcast %cst_7 : f32 to vector<16x1xf32>
    %13 = arith.divf %11, %12 : vector<16x1xf32>
    %14 = vector.broadcast %6 : vector<16x1xf32> to vector<16x32xf32>
    %15 = arith.subf %0, %14 : vector<16x32xf32>
    %cst_8 = arith.constant 9.99999974E-6 : f32
    %16 = vector.broadcast %cst_8 : f32 to vector<16x1xf32>
    %17 = arith.addf %13, %16 : vector<16x1xf32>
    %18 = math.rsqrt %17 : vector<16x1xf32>
    %19 = vector.broadcast %18 : vector<16x1xf32> to vector<16x32xf32>
    %20 = arith.mulf %15, %19 : vector<16x32xf32>
    %21 = vector.broadcast %1 : vector<1x32xf32> to vector<16x32xf32>
    %22 = arith.mulf %20, %21 : vector<16x32xf32>
    %23 = vector.broadcast %2 : vector<1x32xf32> to vector<16x32xf32>
    %24 = arith.addf %22, %23 : vector<16x32xf32>
    %25 = arith.truncf %24 : vector<16x32xf32> to vector<16x32xbf16>
    %c0_9 = arith.constant 0 : index
    %c0_10 = arith.constant 0 : index
    %26 = vector.load %arg1[%c0_9, %c0_10] : memref<32x128xbf16, #tpu.memory_space<vmem>>, vector<32x128xbf16>
    %cst_11 = arith.constant dense<0.000000e+00> : vector<16x128xf32>
    %27 = tpu.matmul %25, %26, %cst_11 {dimension_numbers = #tpu.dot_dimension_numbers<[1], [0], [0], [1], [0, 0, 1, 1], [], []>} : vector<16x32xbf16>, vector<32x128xbf16>, vector<16x128xf32> -> vector<16x128xf32>
    %28 = tpu.iota {dimensions = array<i32: 0>} : vector<8x8xi32>
    %29 = tpu.iota {dimensions = array<i32: 1>} : vector<8x8xi32>
    %30 = arith.cmpi sge, %28, %29 : vector<8x8xi32>
    %31 = vector.shape_cast %30 : vector<8x8xi1> to vector<1x8x8xi1>
    %32 = vector.extract_strided_slice %27 {offsets = [0, 0], sizes = [16, 8], strides = [1, 1]} : vector<16x128xf32> to vector<16x8xf32>
    %33 = vector.extract_strided_slice %27 {offsets = [0, 32], sizes = [16, 8], strides = [1, 1]} : vector<16x128xf32> to vector<16x8xf32>
    %34 = vector.extract_strided_slice %27 {offsets = [0, 64], sizes = [16, 8], strides = [1, 1]} : vector<16x128xf32> to vector<16x8xf32>
    %35 = vector.shape_cast %32 : vector<16x8xf32> to vector<2x8x8xf32>
    %36 = arith.truncf %35 : vector<2x8x8xf32> to vector<2x8x8xbf16>
    %37 = vector.shape_cast %33 : vector<16x8xf32> to vector<2x8x8xf32>
    %38 = arith.truncf %37 : vector<2x8x8xf32> to vector<2x8x8xbf16>
    %39 = vector.shape_cast %34 : vector<16x8xf32> to vector<2x8x8xf32>
    %40 = arith.truncf %39 : vector<2x8x8xf32> to vector<2x8x8xbf16>
    "tpu.trace_start"() <{level = 10 : i32, message = "bqd,bkd->bqk"}> : () -> ()
    %cst_12 = arith.constant dense<0.000000e+00> : vector<2x8x8xf32>
    %41 = tpu.matmul %36, %38, %cst_12 {dimension_numbers = #tpu.dot_dimension_numbers<[2], [2], [1], [1], [0, 0, 0, 1, 1, 1], [0], [0]>} : vector<2x8x8xbf16>, vector<2x8x8xbf16>, vector<2x8x8xf32> -> vector<2x8x8xf32>
    %cst_13 = arith.constant -1.000000e+30 : f32
    "tpu.trace_stop"() : () -> ()
    %42 = vector.shape_cast %31 : vector<1x8x8xi1> to vector<1x8x8xi1>
    %43 = vector.broadcast %42 : vector<1x8x8xi1> to vector<2x8x8xi1>
    %44 = vector.broadcast %cst_13 : f32 to vector<2x8x8xf32>
    %45 = arith.select %43, %41, %44 : vector<2x8x8xi1>, vector<2x8x8xf32>
    %cst_14 = arith.constant dense<0xFF800000> : vector<2x8xf32>
    %46 = vector.multi_reduction <maximumf>, %45, %cst_14 [2] : vector<2x8x8xf32> to vector<2x8xf32>
    %47 = vector.shape_cast %46 : vector<2x8xf32> to vector<2x8x1xf32>
    %48 = vector.broadcast %47 : vector<2x8x1xf32> to vector<2x8x8xf32>
    %49 = arith.subf %45, %48 : vector<2x8x8xf32>
    %50 = math.exp %49 : vector<2x8x8xf32>
    %cst_15 = arith.constant dense<0.000000e+00> : vector<2x8xf32>
    %51 = vector.multi_reduction <add>, %50, %cst_15 [2] : vector<2x8x8xf32> to vector<2x8xf32>
    %52 = vector.shape_cast %51 : vector<2x8xf32> to vector<2x8x1xf32>
    %53 = tpu.reciprocal %52 {approx = true} : vector<2x8x1xf32> -> vector<2x8x1xf32>
    %54 = vector.broadcast %53 : vector<2x8x1xf32> to vector<2x8x8xf32>
    %55 = arith.mulf %50, %54 : vector<2x8x8xf32>
    %56 = arith.truncf %55 : vector<2x8x8xf32> to vector<2x8x8xbf16>
    "tpu.trace_start"() <{level = 10 : i32, message = "bqk,bkd->bqd"}> : () -> ()
    %cst_16 = arith.constant dense<0.000000e+00> : vector<2x8x8xf32>
    %57 = tpu.matmul %56, %40, %cst_16 {dimension_numbers = #tpu.dot_dimension_numbers<[2], [1], [1], [2], [0, 0, 0, 1, 1, 2], [0], [0]>} : vector<2x8x8xbf16>, vector<2x8x8xbf16>, vector<2x8x8xf32> -> vector<2x8x8xf32>
    "tpu.trace_stop"() : () -> ()
    %58 = vector.shape_cast %57 : vector<2x8x8xf32> to vector<16x8xf32>
    %59 = vector.extract_strided_slice %27 {offsets = [0, 8], sizes = [16, 8], strides = [1, 1]} : vector<16x128xf32> to vector<16x8xf32>
    %60 = vector.extract_strided_slice %27 {offsets = [0, 40], sizes = [16, 8], strides = [1, 1]} : vector<16x128xf32> to vector<16x8xf32>
    %61 = vector.extract_strided_slice %27 {offsets = [0, 72], sizes = [16, 8], strides = [1, 1]} : vector<16x128xf32> to vector<16x8xf32>
    %62 = vector.shape_cast %59 : vector<16x8xf32> to vector<2x8x8xf32>
    %63 = arith.truncf %62 : vector<2x8x8xf32> to vector<2x8x8xbf16>
    %64 = vector.shape_cast %60 : vector<16x8xf32> to vector<2x8x8xf32>
    %65 = arith.truncf %64 : vector<2x8x8xf32> to vector<2x8x8xbf16>
    %66 = vector.shape_cast %61 : vector<16x8xf32> to vector<2x8x8xf32>
    %67 = arith.truncf %66 : vector<2x8x8xf32> to vector<2x8x8xbf16>
    "tpu.trace_start"() <{level = 10 : i32, message = "bqd,bkd->bqk"}> : () -> ()
    %cst_17 = arith.constant dense<0.000000e+00> : vector<2x8x8xf32>
    %68 = tpu.matmul %63, %65, %cst_17 {dimension_numbers = #tpu.dot_dimension_numbers<[2], [2], [1], [1], [0, 0, 0, 1, 1, 1], [0], [0]>} : vector<2x8x8xbf16>, vector<2x8x8xbf16>, vector<2x8x8xf32> -> vector<2x8x8xf32>
    %cst_18 = arith.constant -1.000000e+30 : f32
    "tpu.trace_stop"() : () -> ()
    %69 = vector.shape_cast %31 : vector<1x8x8xi1> to vector<1x8x8xi1>
    %70 = vector.broadcast %69 : vector<1x8x8xi1> to vector<2x8x8xi1>
    %71 = vector.broadcast %cst_18 : f32 to vector<2x8x8xf32>
    %72 = arith.select %70, %68, %71 : vector<2x8x8xi1>, vector<2x8x8xf32>
    %cst_19 = arith.constant dense<0xFF800000> : vector<2x8xf32>
    %73 = vector.multi_reduction <maximumf>, %72, %cst_19 [2] : vector<2x8x8xf32> to vector<2x8xf32>
    %74 = vector.shape_cast %73 : vector<2x8xf32> to vector<2x8x1xf32>
    %75 = vector.broadcast %74 : vector<2x8x1xf32> to vector<2x8x8xf32>
    %76 = arith.subf %72, %75 : vector<2x8x8xf32>
    %77 = math.exp %76 : vector<2x8x8xf32>
    %cst_20 = arith.constant dense<0.000000e+00> : vector<2x8xf32>
    %78 = vector.multi_reduction <add>, %77, %cst_20 [2] : vector<2x8x8xf32> to vector<2x8xf32>
    %79 = vector.shape_cast %78 : vector<2x8xf32> to vector<2x8x1xf32>
    %80 = tpu.reciprocal %79 {approx = true} : vector<2x8x1xf32> -> vector<2x8x1xf32>
    %81 = vector.broadcast %80 : vector<2x8x1xf32> to vector<2x8x8xf32>
    %82 = arith.mulf %77, %81 : vector<2x8x8xf32>
    %83 = arith.truncf %82 : vector<2x8x8xf32> to vector<2x8x8xbf16>
    "tpu.trace_start"() <{level = 10 : i32, message = "bqk,bkd->bqd"}> : () -> ()
    %cst_21 = arith.constant dense<0.000000e+00> : vector<2x8x8xf32>
    %84 = tpu.matmul %83, %67, %cst_21 {dimension_numbers = #tpu.dot_dimension_numbers<[2], [1], [1], [2], [0, 0, 0, 1, 1, 2], [0], [0]>} : vector<2x8x8xbf16>, vector<2x8x8xbf16>, vector<2x8x8xf32> -> vector<2x8x8xf32>
    "tpu.trace_stop"() : () -> ()
    %85 = vector.shape_cast %84 : vector<2x8x8xf32> to vector<16x8xf32>
    %86 = vector.extract_strided_slice %27 {offsets = [0, 16], sizes = [16, 8], strides = [1, 1]} : vector<16x128xf32> to vector<16x8xf32>
    %87 = vector.extract_strided_slice %27 {offsets = [0, 48], sizes = [16, 8], strides = [1, 1]} : vector<16x128xf32> to vector<16x8xf32>
    %88 = vector.extract_strided_slice %27 {offsets = [0, 80], sizes = [16, 8], strides = [1, 1]} : vector<16x128xf32> to vector<16x8xf32>
    %89 = vector.shape_cast %86 : vector<16x8xf32> to vector<2x8x8xf32>
    %90 = arith.truncf %89 : vector<2x8x8xf32> to vector<2x8x8xbf16>
    %91 = vector.shape_cast %87 : vector<16x8xf32> to vector<2x8x8xf32>
    %92 = arith.truncf %91 : vector<2x8x8xf32> to vector<2x8x8xbf16>
    %93 = vector.shape_cast %88 : vector<16x8xf32> to vector<2x8x8xf32>
    %94 = arith.truncf %93 : vector<2x8x8xf32> to vector<2x8x8xbf16>
    "tpu.trace_start"() <{level = 10 : i32, message = "bqd,bkd->bqk"}> : () -> ()
    %cst_22 = arith.constant dense<0.000000e+00> : vector<2x8x8xf32>
    %95 = tpu.matmul %90, %92, %cst_22 {dimension_numbers = #tpu.dot_dimension_numbers<[2], [2], [1], [1], [0, 0, 0, 1, 1, 1], [0], [0]>} : vector<2x8x8xbf16>, vector<2x8x8xbf16>, vector<2x8x8xf32> -> vector<2x8x8xf32>
    %cst_23 = arith.constant -1.000000e+30 : f32
    "tpu.trace_stop"() : () -> ()
    %96 = vector.shape_cast %31 : vector<1x8x8xi1> to vector<1x8x8xi1>
    %97 = vector.broadcast %96 : vector<1x8x8xi1> to vector<2x8x8xi1>
    %98 = vector.broadcast %cst_23 : f32 to vector<2x8x8xf32>
    %99 = arith.select %97, %95, %98 : vector<2x8x8xi1>, vector<2x8x8xf32>
    %cst_24 = arith.constant dense<0xFF800000> : vector<2x8xf32>
    %100 = vector.multi_reduction <maximumf>, %99, %cst_24 [2] : vector<2x8x8xf32> to vector<2x8xf32>
    %101 = vector.shape_cast %100 : vector<2x8xf32> to vector<2x8x1xf32>
    %102 = vector.broadcast %101 : vector<2x8x1xf32> to vector<2x8x8xf32>
    %103 = arith.subf %99, %102 : vector<2x8x8xf32>
    %104 = math.exp %103 : vector<2x8x8xf32>
    %cst_25 = arith.constant dense<0.000000e+00> : vector<2x8xf32>
    %105 = vector.multi_reduction <add>, %104, %cst_25 [2] : vector<2x8x8xf32> to vector<2x8xf32>
    %106 = vector.shape_cast %105 : vector<2x8xf32> to vector<2x8x1xf32>
    %107 = tpu.reciprocal %106 {approx = true} : vector<2x8x1xf32> -> vector<2x8x1xf32>
    %108 = vector.broadcast %107 : vector<2x8x1xf32> to vector<2x8x8xf32>
    %109 = arith.mulf %104, %108 : vector<2x8x8xf32>
    %110 = arith.truncf %109 : vector<2x8x8xf32> to vector<2x8x8xbf16>
    "tpu.trace_start"() <{level = 10 : i32, message = "bqk,bkd->bqd"}> : () -> ()
    %cst_26 = arith.constant dense<0.000000e+00> : vector<2x8x8xf32>
    %111 = tpu.matmul %110, %94, %cst_26 {dimension_numbers = #tpu.dot_dimension_numbers<[2], [1], [1], [2], [0, 0, 0, 1, 1, 2], [0], [0]>} : vector<2x8x8xbf16>, vector<2x8x8xbf16>, vector<2x8x8xf32> -> vector<2x8x8xf32>
    "tpu.trace_stop"() : () -> ()
    %112 = vector.shape_cast %111 : vector<2x8x8xf32> to vector<16x8xf32>
    %113 = vector.extract_strided_slice %27 {offsets = [0, 24], sizes = [16, 8], strides = [1, 1]} : vector<16x128xf32> to vector<16x8xf32>
    %114 = vector.extract_strided_slice %27 {offsets = [0, 56], sizes = [16, 8], strides = [1, 1]} : vector<16x128xf32> to vector<16x8xf32>
    %115 = vector.extract_strided_slice %27 {offsets = [0, 88], sizes = [16, 8], strides = [1, 1]} : vector<16x128xf32> to vector<16x8xf32>
    %116 = vector.shape_cast %113 : vector<16x8xf32> to vector<2x8x8xf32>
    %117 = arith.truncf %116 : vector<2x8x8xf32> to vector<2x8x8xbf16>
    %118 = vector.shape_cast %114 : vector<16x8xf32> to vector<2x8x8xf32>
    %119 = arith.truncf %118 : vector<2x8x8xf32> to vector<2x8x8xbf16>
    %120 = vector.shape_cast %115 : vector<16x8xf32> to vector<2x8x8xf32>
    %121 = arith.truncf %120 : vector<2x8x8xf32> to vector<2x8x8xbf16>
    "tpu.trace_start"() <{level = 10 : i32, message = "bqd,bkd->bqk"}> : () -> ()
    %cst_27 = arith.constant dense<0.000000e+00> : vector<2x8x8xf32>
    %122 = tpu.matmul %117, %119, %cst_27 {dimension_numbers = #tpu.dot_dimension_numbers<[2], [2], [1], [1], [0, 0, 0, 1, 1, 1], [0], [0]>} : vector<2x8x8xbf16>, vector<2x8x8xbf16>, vector<2x8x8xf32> -> vector<2x8x8xf32>
    %cst_28 = arith.constant -1.000000e+30 : f32
    "tpu.trace_stop"() : () -> ()
    %123 = vector.shape_cast %31 : vector<1x8x8xi1> to vector<1x8x8xi1>
    %124 = vector.broadcast %123 : vector<1x8x8xi1> to vector<2x8x8xi1>
    %125 = vector.broadcast %cst_28 : f32 to vector<2x8x8xf32>
    %126 = arith.select %124, %122, %125 : vector<2x8x8xi1>, vector<2x8x8xf32>
    %cst_29 = arith.constant dense<0xFF800000> : vector<2x8xf32>
    %127 = vector.multi_reduction <maximumf>, %126, %cst_29 [2] : vector<2x8x8xf32> to vector<2x8xf32>
    %128 = vector.shape_cast %127 : vector<2x8xf32> to vector<2x8x1xf32>
    %129 = vector.broadcast %128 : vector<2x8x1xf32> to vector<2x8x8xf32>
    %130 = arith.subf %126, %129 : vector<2x8x8xf32>
    %131 = math.exp %130 : vector<2x8x8xf32>
    %cst_30 = arith.constant dense<0.000000e+00> : vector<2x8xf32>
    %132 = vector.multi_reduction <add>, %131, %cst_30 [2] : vector<2x8x8xf32> to vector<2x8xf32>
    %133 = vector.shape_cast %132 : vector<2x8xf32> to vector<2x8x1xf32>
    %134 = tpu.reciprocal %133 {approx = true} : vector<2x8x1xf32> -> vector<2x8x1xf32>
    %135 = vector.broadcast %134 : vector<2x8x1xf32> to vector<2x8x8xf32>
    %136 = arith.mulf %131, %135 : vector<2x8x8xf32>
    %137 = arith.truncf %136 : vector<2x8x8xf32> to vector<2x8x8xbf16>
    "tpu.trace_start"() <{level = 10 : i32, message = "bqk,bkd->bqd"}> : () -> ()
    %cst_31 = arith.constant dense<0.000000e+00> : vector<2x8x8xf32>
    %138 = tpu.matmul %137, %121, %cst_31 {dimension_numbers = #tpu.dot_dimension_numbers<[2], [1], [1], [2], [0, 0, 0, 1, 1, 2], [0], [0]>} : vector<2x8x8xbf16>, vector<2x8x8xbf16>, vector<2x8x8xf32> -> vector<2x8x8xf32>
    "tpu.trace_stop"() : () -> ()
    %139 = vector.shape_cast %138 : vector<2x8x8xf32> to vector<16x8xf32>
    %140 = tpu.concatenate %58, %85, %112, %139 in 1 : vector<16x8xf32>, vector<16x8xf32>, vector<16x8xf32>, vector<16x8xf32> -> vector<16x32xf32>
    %141 = arith.truncf %140 : vector<16x32xf32> to vector<16x32xbf16>
    %c0_32 = arith.constant 0 : index
    %c0_33 = arith.constant 0 : index
    %142 = vector.load %arg2[%c0_32, %c0_33] : memref<32x32xbf16, #tpu.memory_space<vmem>>, vector<32x32xbf16>
    %cst_34 = arith.constant dense<0.000000e+00> : vector<16x32xf32>
    %143 = tpu.matmul %141, %142, %cst_34 {dimension_numbers = #tpu.dot_dimension_numbers<[1], [0], [0], [1], [0, 0, 1, 1], [], []>} : vector<16x32xbf16>, vector<32x32xbf16>, vector<16x32xf32> -> vector<16x32xf32>
    %c0_35 = arith.constant 0 : index
    %c0_36 = arith.constant 0 : index
    %144 = vector.load %arg3[%c0_35, %c0_36] : memref<1x32xf32, #tpu.memory_space<vmem>>, vector<1x32xf32>
    %145 = vector.broadcast %144 : vector<1x32xf32> to vector<16x32xf32>
    %146 = arith.addf %143, %145 : vector<16x32xf32>
    %147 = arith.addf %0, %146 : vector<16x32xf32>
    %c0_37 = arith.constant 0 : index
    %c0_38 = arith.constant 0 : index
    %148 = vector.load %arg6[%c0_37, %c0_38] : memref<1x32xf32, #tpu.memory_space<vmem>>, vector<1x32xf32>
    %c0_39 = arith.constant 0 : index
    %c0_40 = arith.constant 0 : index
    %149 = vector.load %arg7[%c0_39, %c0_40] : memref<1x32xf32, #tpu.memory_space<vmem>>, vector<1x32xf32>
    %cst_41 = arith.constant dense<0.000000e+00> : vector<16xf32>
    %150 = vector.multi_reduction <add>, %147, %cst_41 [1] : vector<16x32xf32> to vector<16xf32>
    %151 = vector.shape_cast %150 : vector<16xf32> to vector<16x1xf32>
    %cst_42 = arith.constant 3.200000e+01 : f32
    %152 = vector.broadcast %cst_42 : f32 to vector<16x1xf32>
    %153 = arith.divf %151, %152 : vector<16x1xf32>
    %154 = vector.broadcast %153 : vector<16x1xf32> to vector<16x32xf32>
    %155 = arith.subf %147, %154 : vector<16x32xf32>
    %156 = arith.mulf %155, %155 : vector<16x32xf32>
    %cst_43 = arith.constant dense<0.000000e+00> : vector<16xf32>
    %157 = vector.multi_reduction <add>, %156, %cst_43 [1] : vector<16x32xf32> to vector<16xf32>
    %158 = vector.shape_cast %157 : vector<16xf32> to vector<16x1xf32>
    %cst_44 = arith.constant 3.200000e+01 : f32
    %159 = vector.broadcast %cst_44 : f32 to vector<16x1xf32>
    %160 = arith.divf %158, %159 : vector<16x1xf32>
    %161 = vector.broadcast %153 : vector<16x1xf32> to vector<16x32xf32>
    %162 = arith.subf %147, %161 : vector<16x32xf32>
    %cst_45 = arith.constant 9.99999974E-6 : f32
    %163 = vector.broadcast %cst_45 : f32 to vector<16x1xf32>
    %164 = arith.addf %160, %163 : vector<16x1xf32>
    %165 = math.rsqrt %164 : vector<16x1xf32>
    %166 = vector.broadcast %165 : vector<16x1xf32> to vector<16x32xf32>
    %167 = arith.mulf %162, %166 : vector<16x32xf32>
    %168 = vector.broadcast %148 : vector<1x32xf32> to vector<16x32xf32>
    %169 = arith.mulf %167, %168 : vector<16x32xf32>
    %170 = vector.broadcast %149 : vector<1x32xf32> to vector<16x32xf32>
    %171 = arith.addf %169, %170 : vector<16x32xf32>
    %172 = arith.truncf %171 : vector<16x32xf32> to vector<16x32xbf16>
    %c0_46 = arith.constant 0 : index
    %c0_47 = arith.constant 0 : index
    %173 = vector.load %arg8[%c0_46, %c0_47] : memref<32x128xbf16, #tpu.memory_space<vmem>>, vector<32x128xbf16>
    %cst_48 = arith.constant dense<0.000000e+00> : vector<16x128xf32>
    %174 = tpu.matmul %172, %173, %cst_48 {dimension_numbers = #tpu.dot_dimension_numbers<[1], [0], [0], [1], [0, 0, 1, 1], [], []>} : vector<16x32xbf16>, vector<32x128xbf16>, vector<16x128xf32> -> vector<16x128xf32>
    %c0_49 = arith.constant 0 : index
    %c0_50 = arith.constant 0 : index
    %175 = vector.load %arg9[%c0_49, %c0_50] : memref<1x128xf32, #tpu.memory_space<vmem>>, vector<1x128xf32>
    %176 = vector.broadcast %175 : vector<1x128xf32> to vector<16x128xf32>
    %177 = arith.addf %174, %176 : vector<16x128xf32>
    %cst_51 = arith.constant 0.000000e+00 : f32
    %178 = vector.broadcast %cst_51 : f32 to vector<16x128xf32>
    %179 = arith.maximumf %177, %178 : vector<16x128xf32>
    %180 = arith.truncf %179 : vector<16x128xf32> to vector<16x128xbf16>
    %c0_52 = arith.constant 0 : index
    %c0_53 = arith.constant 0 : index
    %181 = vector.load %arg10[%c0_52, %c0_53] : memref<128x32xbf16, #tpu.memory_space<vmem>>, vector<128x32xbf16>
    %cst_54 = arith.constant dense<0.000000e+00> : vector<16x32xf32>
    %182 = tpu.matmul %180, %181, %cst_54 {dimension_numbers = #tpu.dot_dimension_numbers<[1], [0], [0], [1], [0, 0, 1, 1], [], []>} : vector<16x128xbf16>, vector<128x32xbf16>, vector<16x32xf32> -> vector<16x32xf32>
    %c0_55 = arith.constant 0 : index
    %c0_56 = arith.constant 0 : index
    %183 = vector.load %arg11[%c0_55, %c0_56] : memref<1x32xf32, #tpu.memory_space<vmem>>, vector<1x32xf32>
    %184 = vector.broadcast %183 : vector<1x32xf32> to vector<16x32xf32>
    %185 = arith.addf %182, %184 : vector<16x32xf32>
    %186 = arith.addf %147, %185 : vector<16x32xf32>
    %c0_57 = arith.constant 0 : index
    %c0_58 = arith.constant 0 : index
    %187 = vector.load %arg12[%c0_57, %c0_58] : memref<16x32xf32, #tpu.memory_space<vmem>>, vector<16x32xf32>
    tpu.vector_store %arg12[%c0_57, %c0_58], %186 {strides = array<i32>} : memref<16x32xf32, #tpu.memory_space<vmem>>, vector<16x32xf32>,
    return
  }
}

</mosaic_0001>

<bundles_post_ra>
// kernel: block_forward.1
= control target key start
LH: loop header
LB: loop body
LE: loop exit
PB: predicated region body
PF: predicated region fallthrough
CT: control target
= control target key end

     0   :  { %vm46_vm0 = vcmask 261120   ;;  %v1038_v4 = vmov 32.0   ;;  %s1040_s13 = smov 88   ;;  %s1041_s14 = smov 96   ;;  %vm154_vm8 = vcmask 64512   ;;  %vm231_vm9 = vcmask 1043456   ;;  %s1366_s0 = inlined_call_operand.vmem [shape: f32[16,32], index: 0, kind: input, shape index: {}, may-alias: {0,12}]   ;;  %s1367_s4 = inlined_call_operand.vmem [shape: f32[1,32], index: 4, kind: input, shape index: {}]   ;;  %s1368_s5 = inlined_call_operand.vmem [shape: f32[1,32], index: 5, kind: input, shape index: {}]   ;;  %s1369_s1 = inlined_call_operand.vmem [shape: bf16[32,128], index: 1, kind: input, shape index: {}]   ;;  %s1370_s3 = inlined_call_operand.vmem [shape: f32[1,32], index: 3, kind: input, shape index: {}]   ;;  %s1371_s2 = inlined_call_operand.vmem [shape: bf16[32,32], index: 2, kind: input, shape index: {}]   ;;  %s1372_s6 = inlined_call_operand.vmem [shape: f32[1,32], index: 6, kind: input, shape index: {}]   ;;  %s1373_s7 = inlined_call_operand.vmem [shape: f32[1,32], index: 7, kind: input, shape index: {}]   ;;  %s1374_s9 = inlined_call_operand.vmem [shape: f32[1,128], index: 9, kind: input, shape index: {}]   ;;  %s1375_s8 = inlined_call_operand.vmem [shape: bf16[32,128], index: 8, kind: input, shape index: {}]   ;;  %s1376_s10 = inlined_call_operand.vmem [shape: bf16[128,32], index: 10, kind: input, shape index: {}]   ;;  %s1377_s11 = inlined_call_operand.vmem [shape: f32[1,32], index: 11, kind: input, shape index: {}]   ;;  %s1378_s12 = inlined_call_operand.vmem [shape: f32[16,32], index: 12, kind: output, shape index: {}, may-alias: {0,12}]  }
   0x1   :  { %v1121_v0 = vld [vmem:[%s1366_s0] sm:$0xff]  ;;  %v1128_v2 = vld [vmem:[%s1366_s0 + $0x8] sm:$0xff]  ;;  %996 = vrcp.f32 %v1038_v4  ;;  %s1043_s15 = smov 80   ;;  %s1044_s16 = smov 104   ;;  %vm637_vm11 = vcmask 130048   ;;  %vm640_vm12 = vcmask 195584  }
   0x2   :  { %v47_v1 = vsel %vm46_vm0, %v1121_v0, 0.0  ;;  %v50_v3 = vsel %vm46_vm0, %v1128_v2, 0.0  ;;  %v946_v21 = vld [vmem:[%s1369_s1 + $0x8] sm:$0xff]  ;;  %v945_v23 = vld [vmem:[%s1369_s1] sm:$0xff]  ;;  %s1045_s17 = smov 72   ;;  %s1046_s18 = smov 64  }
   0x3   :  { %48 = vadd.xlane.f32.xlu0 %v47_v1  ;;  %134 = vmatpush.bf16.msra.mxu0 %v946_v21  ;;  %v989_v42 = vld [vmem:[%s1367_s4] ss:$0 sm:$0xff]  ;;  %s1039_s4 = smov 120   ;;  %s1047_s19 = smov 48  }
   0x4   :  { %v990_v47 = vld [vmem:[%s1368_s5] ss:$0 sm:$0xff]  ;;  %s1042_s5 = smov 112   ;;  %s1048_s20 = smov 56  }
   0x5   :  { %s1049_s21 = smov 40   ;;  %s1050_s22 = smov 8  }
   0x6   :  { %s1051_s23 = smov 16   ;;  %s1052_s24 = smov 24  }
   0x7   :  { %v997_v5 = vpop.eup %996  ;;  %135 = vmatpush.bf16.msra.mxu0 %v945_v23  ;;  %v142_v23 = vlaneseq }
   0x8   :  { %v54_v6 = vmul.f32 32.0, %v997_v5  ;;  %vm58_vm1 = vweird.f32 %v997_v5 }
   0xa   :  { %v55_v7 = vsub.f32 1.0, %v54_v6 }
   0xb   :  { %51 = vadd.xlane.f32.xlu0 %v50_v3 }
   0xc   :  { %v56_v8 = vmul.f32 %v997_v5, %v55_v7 }
   0xe   :  { %v57_v9 = vadd.f32 %v997_v5, %v56_v8 }
  0x10   :  { %v1132_v10 = vsel %vm58_vm1, %v997_v5, %v57_v9 }
  0x76   :  { %v49_v11 = vpop.xlane.xlu0 %48 }
  0x77   :  { %v60_v12 = vmul.f32 %v1132_v10, %v49_v11 }
  0x79   :  { %v62_v13 = vsub.f32 %v1121_v0, %v60_v12 }
  0x7b   :  { %v64_v14 = vmul.f32 %v62_v13, %v62_v13 }
  0x7d   :  { %v66_v15 = vsel %vm46_vm0, %v64_v14, 0.0 }
  0x7e   :  { %67 = vadd.xlane.f32.xlu1 %v66_v15  ;;  %v52_v16 = vpop.xlane.xlu0 %51 }
  0x7f   :  { %v61_v17 = vmul.f32 %v1132_v10, %v52_v16 }
  0x81   :  { %v63_v18 = vsub.f32 %v1128_v2, %v61_v17 }
  0x83   :  { %v65_v19 = vmul.f32 %v63_v18, %v63_v18 }
  0x85   :  { %v69_v20 = vsel %vm46_vm0, %v65_v19, 0.0 }
  0x86   :  { %70 = vadd.xlane.f32.xlu1 %v69_v20 }
  0xf1   :  { %v68_v22 = vpop.xlane.xlu1 %67 }
  0xf2   :  { %v72_v24 = vmul.f32 %v68_v22, %v1132_v10 }
  0xf4   :  { %v74_v25 = vadd.f32 1e-05, %v72_v24  ;;  %v143_v24 = vshrl.u32 %v142_v23, 7 }
  0xf6   :  { %998 = vrsqrt.f32 %v74_v25  ;;  %vm82_vm3 = vweird.f32 %v74_v25 }
  0xf9   :  { %v71_v26 = vpop.xlane.xlu1 %70 }
  0xfa   :  { %v73_v27 = vmul.f32 %v71_v26, %v1132_v10 }
  0xfc   :  { %v999_v28 = vpop.eup %998  ;;  %v75_v29 = vadd.f32 1e-05, %v73_v27 }
  0xfd   :  { %v77_v30 = vmul.f32 %v999_v28, %v74_v25  ;;  %vm83_vm2 = vweird.f32 %v999_v28  ;;  %v145_v25 = vand.u32 127, %v142_v23 }
  0xfe   :  { %1000 = vrsqrt.f32 %v75_v29  ;;  %vm84_vm4 = vmor %vm82_vm3, %vm83_vm2  ;;  %vm92_vm6 = vweird.f32 %v75_v29 }
  0xff   :  { %v78_v31 = vmul.f32 %v999_v28, %v77_v30  ;;  %vm1192_vm10 = vcmp.ge.s32.totalorder %v143_v24, %v145_v25 }
 0x101   :  { %v79_v32 = vmul.f32 0.5, %v78_v31 }
 0x103   :  { %v80_v33 = vsub.f32 1.5, %v79_v32 }
 0x104   :  { %v1001_v34 = vpop.eup %1000 }
 0x105   :  { %v81_v35 = vmul.f32 %v999_v28, %v80_v33  ;;  %v87_v36 = vmul.f32 %v1001_v34, %v75_v29  ;;  %vm93_vm5 = vweird.f32 %v1001_v34 }
 0x106   :  { %vm94_vm7 = vmor %vm92_vm6, %vm93_vm5 }
 0x107   :  { %v88_v37 = vmul.f32 %v1001_v34, %v87_v36  ;;  %v85_v38 = vsel %vm84_vm4, %v999_v28, %v81_v35 }
 0x108   :  { %v96_v41 = vmul.f32 %v85_v38, %v62_v13 }
 0x109   :  { %v89_v39 = vmul.f32 0.5, %v88_v37 }
 0x10a   :  { %v101_v46 = vmul.f32 %v989_v42, %v96_v41 }
 0x10b   :  { %v90_v40 = vsub.f32 1.5, %v89_v39 }
 0x10c   :  { %v106_v49 = vadd.f32 %v990_v47, %v101_v46 }
 0x10d   :  { %v91_v43 = vmul.f32 %v1001_v34, %v90_v40 }
 0x10f   :  { %v95_v44 = vsel %vm94_vm7, %v1001_v34, %v91_v43 }
 0x110   :  { %v97_v45 = vmul.f32 %v95_v44, %v63_v18 }
 0x112   :  { %v102_v48 = vmul.f32 %v989_v42, %v97_v45 }
 0x114   :  { %v107_v50 = vadd.f32 %v990_v47, %v102_v48 }
 0x116   :  { %v108_v51 = vpack.c.bf16 %v107_v50, %v106_v49 }
 0x118   :  { %878 = vmatmul.msk.bf16.vlgmr.msra.gmra.mxu0 %vm46_vm0, %v108_v51 }
 0x195   :  { %v137_v52 = vpop.f32.mrf.mxu0 }
 0x196   :  { %v147_v53 = vpack.c.bf16 %v137_v52, %v137_v52 }
 0x198   :  { %v150_v54 = vunpack.c.l.b16 %v147_v53 }
 0x19a   :  { %v1155_v55 = vpack.c.b16 %v150_v54, %v150_v54 }
 0x19c   :  { %269 = vrot.lane.b32.xlu1 %v1155_v55, %s1039_s4  ;;  %271 = vrot.lane.b32.xlu0 %v1155_v55, %s1040_s13 }
 0x19d   :  { %152 = vrot.lane.b32.xlu2 %v1155_v55, %s1041_s14  ;;  %v139_v56 = vpop.f32.mrf.mxu0 }
 0x19e   :  { %v148_v57 = vpack.c.bf16 %v139_v56, %v139_v56 }
 0x1a0   :  { %v175_v58 = vunpack.c.l.b16 %v148_v57 }
 0x1a2   :  { %v1160_v59 = vpack.c.b16 %v175_v58, %v175_v58 }
 0x1a4   :  { %406 = vrot.lane.b32.xlu1 %v1160_v59, %s1042_s5  ;;  %408 = vrot.lane.b32.xlu0 %v1160_v59, %s1043_s15 }
 0x1a5   :  { %177 = vrot.lane.b32.xlu2 %v1160_v59, %s1041_s14 }
 0x1ac   :  { %497 = vrot.lane.b32.xlu1 %v1155_v55, %s1044_s16  ;;  %499 = vrot.lane.b32.xlu0 %v1155_v55, %s1045_s17 }
 0x1ad   :  { %294 = vrot.lane.b32.xlu2 %v1160_v59, %s1040_s13 }
 0x1b4   :  { %520 = vrot.lane.b32.xlu0 %v1160_v59, %s1044_s16 }
 0x1b5   :  { %292 = vrot.lane.b32.xlu2 %v1160_v59, %s1039_s4 }
 0x1bc   :  { %226 = vrot.lane.b32.xlu0 %v1155_v55, %s1046_s18 }
 0x1bd   :  { %385 = vrot.lane.b32.xlu2 %v1155_v55, %s1043_s15 }
 0x1c5   :  { %383 = vrot.lane.b32.xlu2 %v1155_v55, %s1042_s5 }
 0x1cd   :  { %522 = vrot.lane.b32.xlu2 %v1160_v59, %s1045_s17 }
 0x1f7   :  { %v153_v60 = vpop.permute.xlu2 %152 }
 0x1f8   :  { %v159_v61 = vsel %vm154_vm8, %v153_v60, 0 }
 0x1f9   :  { %168 = vmatpush.bf16.xpose.msra.mxu1 %v159_v61 }
 0x1ff   :  { %v178_v62 = vpop.permute.xlu2 %177 }
 0x200   :  { %879 = vmatmul.msk.bf16.vlgmr.msra.gmra.mxu1 %vm154_vm8, %v147_v53  ;;  %v183_v63 = vsel %vm154_vm8, %v178_v62, 0 }
 0x201   :  { %192 = vmatpush.bf16.xpose.msra.mxu2 %v183_v63 }
 0x207   :  { %v295_v1 = vpop.permute.xlu2 %294 }
 0x208   :  { %880 = vmatmul.msk.bf16.vlgmr.msra.gmra.mxu2 %vm154_vm8, %v148_v57  ;;  %v300_v3 = vsel %vm154_vm8, %v295_v1, 0 }
 0x209   :  { %309 = vmatpush.bf16.xpose.msrb.mxu1 %v300_v3 }
 0x20e   :  { %v272_v4 = vpop.permute.xlu0 %271  ;;  %v270_v7 = vpop.permute.xlu1 %269 }
 0x20f   :  { %v293_v5 = vpop.permute.xlu2 %292  ;;  %v277_v6 = vsel %vm154_vm8, %v272_v4, 0 }
 0x210   :  { %884 = vmatmul.msk.bf16.vlgmr.msrb.gmra.mxu1 %vm154_vm8, %v293_v5  ;;  %286 = vmatpush.bf16.xpose.msrb.mxu0 %v277_v6 }
 0x216   :  { %v409_v8 = vpop.permute.xlu0 %408  ;;  %v407_v14 = vpop.permute.xlu1 %406 }
 0x217   :  { %v414_v9 = vsel %vm154_vm8, %v409_v8, 0  ;;  %v386_v11 = vpop.permute.xlu2 %385  ;;  %883 = vmatmul.msk.bf16.vlgmr.msrb.gmra.mxu0 %vm154_vm8, %v270_v7 }
 0x218   :  { %v391_v12 = vsel %vm154_vm8, %v386_v11, 0  ;;  %423 = vmatpush.bf16.xpose.msra.mxu1 %v414_v9 }
 0x219   :  { %400 = vmatpush.bf16.xpose.msra.mxu0 %v391_v12 }
 0x21e   :  { %v500_v13 = vpop.permute.xlu0 %499  ;;  %v498_v22 = vpop.permute.xlu1 %497 }
 0x21f   :  { %v505_v15 = vsel %vm154_vm8, %v500_v13, 0  ;;  %v384_v16 = vpop.permute.xlu2 %383 }
 0x220   :  { %888 = vmatmul.msk.bf16.vlgmr.msra.gmra.mxu1 %vm154_vm8, %v407_v14 }
 0x221   :  { %514 = vmatpush.bf16.xpose.msrb.mxu0 %v505_v15 }
 0x226   :  { %v521_v17 = vpop.permute.xlu0 %520 }
 0x227   :  { %v523_v18 = vpop.permute.xlu2 %522  ;;  %887 = vmatmul.msk.bf16.vlgmr.msra.gmra.mxu0 %vm154_vm8, %v384_v16 }
 0x228   :  { %v528_v19 = vsel %vm154_vm8, %v523_v18, 0 }
 0x229   :  { %537 = vmatpush.bf16.xpose.msrb.mxu1 %v528_v19 }
 0x22e   :  { %v227_v20 = vpop.permute.xlu0 %226 }
 0x22f   :  { %v233_v21 = vsel %vm231_vm9, %v227_v20, 0 }
 0x230   :  { %892 = vmatmul.msk.bf16.vlgmr.msrb.gmra.mxu1 %vm154_vm8, %v521_v17  ;;  %242 = vmatpush.bf16.msra.mxu3 %v233_v21 }
 0x237   :  { %891 = vmatmul.msk.bf16.vlgmr.msrb.gmra.mxu0 %vm154_vm8, %v498_v22 }
 0x27d   :  { %v170_v27 = vpop.f32.mrf.mxu1 }
 0x27e   :  { %v200_v28 = vsel %vm1192_vm10, %v170_v27, -1e+30 }
 0x27f   :  { %v202_v29 = vsel %vm154_vm8, %v200_v28, -inf }
 0x280   :  { %203 = vmax.xlane.f32.xlu2 %v202_v29 }
 0x285   :  { %v172_v30 = vpop.f32.mrf.mxu1 }
 0x28b   :  { %v194_v31 = vpop.f32.mrf.mxu2 }
 0x28c   :  { %v201_v32 = vsel %vm1192_vm10, %v194_v31, -1e+30 }
 0x28d   :  { %v311_v33 = vpop.f32.mrf.mxu1  ;;  %v205_v34 = vsel %vm154_vm8, %v201_v32, -inf }
 0x28e   :  { %v1204_v35 = vsel %vm1192_vm10, %v311_v33, -1e+30  ;;  %206 = vmax.xlane.f32.xlu1 %v205_v34 }
 0x28f   :  { %v320_v36 = vsel %vm154_vm8, %v1204_v35, -inf }
 0x290   :  { %321 = vmax.xlane.f32.xlu2 %v320_v36 }
 0x293   :  { %v196_v37 = vpop.f32.mrf.mxu2 }
 0x294   :  { %v288_v38 = vpop.f32.mrf.mxu0 }
 0x295   :  { %v315_v39 = vsel %vm1192_vm10, %v288_v38, -1e+30  ;;  %v313_v40 = vpop.f32.mrf.mxu1 }
 0x296   :  { %v317_v41 = vsel %vm154_vm8, %v315_v39, -inf }
 0x297   :  { %318 = vmax.xlane.f32.xlu0 %v317_v41 }
 0x29c   :  { %v290_v42 = vpop.f32.mrf.mxu0 }
 0x29d   :  { %v425_v43 = vpop.f32.mrf.mxu1 }
 0x29e   :  { %v1213_v44 = vsel %vm1192_vm10, %v425_v43, -1e+30 }
 0x29f   :  { %v434_v45 = vsel %vm154_vm8, %v1213_v44, -inf }
 0x2a0   :  { %435 = vmax.xlane.f32.xlu1 %v434_v45 }
 0x2a4   :  { %v402_v46 = vpop.f32.mrf.mxu0 }
 0x2a5   :  { %v429_v47 = vsel %vm1192_vm10, %v402_v46, -1e+30  ;;  %v427_v48 = vpop.f32.mrf.mxu1 }
 0x2a6   :  { %v431_v49 = vsel %vm154_vm8, %v429_v47, -inf }
 0x2a7   :  { %432 = vmax.xlane.f32.xlu2 %v431_v49 }
 0x2ac   :  { %v404_v50 = vpop.f32.mrf.mxu0 }
 0x2ad   :  { %v539_v51 = vpop.f32.mrf.mxu1 }
 0x2ae   :  { %v1222_v52 = vsel %vm1192_vm10, %v539_v51, -1e+30 }
 0x2af   :  { %v548_v53 = vsel %vm154_vm8, %v1222_v52, -inf }
 0x2b0   :  { %549 = vmax.xlane.f32.xlu0 %v548_v53 }
 0x2b4   :  { %v516_v54 = vpop.f32.mrf.mxu0 }
 0x2b5   :  { %v543_v56 = vsel %vm1192_vm10, %v516_v54, -1e+30  ;;  %v541_v57 = vpop.f32.mrf.mxu1 }
 0x2b6   :  { %v545_v58 = vsel %vm154_vm8, %v543_v56, -inf }
 0x2b7   :  { %546 = vmax.xlane.f32.xlu2 %v545_v58 }
 0x2bc   :  { %v518_v60 = vpop.f32.mrf.mxu0 }
 0x2c4   :  { %455 = vrot.lane.b32.xlu0 %v1155_v55, %s1047_s19 }
 0x2cf   :  { %341 = vrot.lane.b32.xlu2 %v1155_v55, %s1048_s20 }
 0x2f3   :  { %v204_v61 = vpop.xlane.xlu2 %203 }
 0x2f4   :  { %v208_v62 = vsub.f32 %v200_v28, %v204_v61 }
 0x2f6   :  { %v210_v63 = vmul.f32 1.442695, %v208_v62 }
 0x2f8   :  { %1002 = vpow2.f32 %v210_v63 }
 0x2fe   :  { %v1003_v1 = vpop.eup %1002 }
 0x2ff   :  { %v214_v3 = vsel %vm154_vm8, %v1003_v1, 0.0 }
 0x300   :  { %215 = vadd.xlane.f32.xlu1 %v214_v3 }
 0x301   :  { %v207_v4 = vpop.xlane.xlu1 %206 }
 0x302   :  { %v209_v7 = vsub.f32 %v201_v32, %v207_v4 }
 0x303   :  { %v322_v11 = vpop.xlane.xlu2 %321 }
 0x304   :  { %v212_v9 = vmul.f32 1.442695, %v209_v7  ;;  %v324_v25 = vsub.f32 %v1204_v35, %v322_v11 }
 0x306   :  { %v327_v27 = vmul.f32 1.442695, %v324_v25 }
 0x30a   :  { %v319_v5 = vpop.xlane.xlu0 %318 }
 0x30b   :  { %v323_v6 = vsub.f32 %v315_v39, %v319_v5 }
 0x30d   :  { %v325_v8 = vmul.f32 1.442695, %v323_v6 }
 0x30f   :  { %1004 = vpow2.f32 %v325_v8 }
 0x310   :  { %1006 = vpow2.f32 %v212_v9 }
 0x313   :  { %v436_v33 = vpop.xlane.xlu1 %435 }
 0x314   :  { %v438_v34 = vsub.f32 %v1213_v44, %v436_v33 }
 0x315   :  { %v1234_v12 = vpop.eup %1004 }
 0x316   :  { %v329_v13 = vsel %vm154_vm8, %v1234_v12, 0.0  ;;  %v1007_v15 = vpop.eup %1006  ;;  %v441_v35 = vmul.f32 1.442695, %v438_v34 }
 0x317   :  { %330 = vadd.xlane.f32.xlu2 %v329_v13  ;;  %v217_v18 = vsel %vm154_vm8, %v1007_v15, 0.0 }
 0x319   :  { %248 = vrot.lane.b32.xlu1 %v1160_v59, %s1046_s18 }
 0x31a   :  { %v433_v14 = vpop.xlane.xlu2 %432 }
 0x31b   :  { %v437_v16 = vsub.f32 %v429_v47, %v433_v14 }
 0x31d   :  { %v439_v17 = vmul.f32 1.442695, %v437_v16 }
 0x31f   :  { %1008 = vpow2.f32 %v439_v17  ;;  %218 = vadd.xlane.f32.xlu2 %v217_v18 }
 0x323   :  { %v550_v24 = vpop.xlane.xlu0 %549 }
 0x324   :  { %v552_v39 = vsub.f32 %v1222_v52, %v550_v24 }
 0x325   :  { %v1241_v19 = vpop.eup %1008 }
 0x326   :  { %v443_v20 = vsel %vm154_vm8, %v1241_v19, 0.0  ;;  %v555_v40 = vmul.f32 1.442695, %v552_v39 }
 0x327   :  { %444 = vadd.xlane.f32.xlu0 %v443_v20 }
 0x32a   :  { %v547_v21 = vpop.xlane.xlu2 %546 }
 0x32b   :  { %v551_v22 = vsub.f32 %v543_v56, %v547_v21 }
 0x32d   :  { %v553_v23 = vmul.f32 1.442695, %v551_v22 }
 0x32f   :  { %1010 = vpow2.f32 %v553_v23 }
 0x330   :  { %1012 = vpow2.f32 %v327_v27 }
 0x331   :  { %1014 = vpow2.f32 %v441_v35 }
 0x332   :  { %v342_v45 = vpop.permute.xlu2 %341 }
 0x333   :  { %v347_v49 = vsel %vm231_vm9, %v342_v45, 0  ;;  %v947_v45 = vld [vmem:[%s1371_s2] sm:$0xff] }
 0x335   :  { %v1246_v26 = vpop.eup %1010 }
 0x336   :  { %v456_v28 = vpop.permute.xlu0 %455  ;;  %v557_v29 = vsel %vm154_vm8, %v1246_v26, 0.0  ;;  %v1013_v31 = vpop.eup %1012 }
 0x337   :  { %362 = vrot.lane.b32.xlu2 %v1160_v59, %s1048_s20  ;;  %v461_v30 = vsel %vm231_vm9, %v456_v28, 0  ;;  %558 = vadd.xlane.f32.xlu0 %v557_v29  ;;  %v332_v32 = vsel %vm154_vm8, %v1013_v31, 0.0  ;;  %v1256_v36 = vpop.eup %1014 }
 0x338   :  { %470 = vmatpush.bf16.msrb.mxu2 %v461_v30  ;;  %v446_v37 = vsel %vm154_vm8, %v1256_v36, 0.0 }
 0x343   :  { %333 = vadd.xlane.f32.xlu1 %v332_v32 }
 0x34b   :  { %590 = vrot.lane.b32.xlu0 %v1160_v59, %s1049_s21 }
 0x35c   :  { %476 = vrot.lane.b32.xlu1 %v1160_v59, %s1047_s19 }
 0x360   :  { %447 = vadd.xlane.f32.xlu2 %v446_v37 }
 0x373   :  { %v216_v38 = vpop.xlane.xlu1 %215 }
 0x374   :  { %1016 = vrcp.f32 %v216_v38 }
 0x375   :  { %1018 = vpow2.f32 %v555_v40 }
 0x378   :  { %569 = vrot.lane.b32.xlu2 %v1155_v55, %s1049_s21 }
 0x37a   :  { %v1017_v41 = vpop.eup %1016 }
 0x37b   :  { %v222_v42 = vmul.f32 %v1017_v41, %v1003_v1  ;;  %v1019_v44 = vpop.eup %1018 }
 0x37c   :  { %v560_v59 = vsel %vm154_vm8, %v1019_v44, 0.0 }
 0x37d   :  { %v224_v43 = vpack.c.bf16 %v222_v42, %v222_v42 }
 0x37f   :  { %881 = vmatmul.msk.bf16.vlgmr.msra.gmra.mxu3 %vm154_vm8, %v224_v43 }
 0x386   :  { %561 = vadd.xlane.f32.xlu1 %v560_v59 }
 0x38a   :  { %v331_v46 = vpop.xlane.xlu2 %330 }
 0x38b   :  { %v249_v47 = vpop.permute.xlu1 %248 }
 0x38c   :  { %v254_v48 = vsel %vm231_vm9, %v249_v47, 0 }
 0x38d   :  { %263 = vmatpush.bf16.msrb.mxu3 %v254_v48 }
 0x391   :  { %356 = vmatpush.bf16.msra.mxu3 %v347_v49 }
 0x392   :  { %v219_v55 = vpop.xlane.xlu2 %218 }
 0x393   :  { %1020 = vrcp.f32 %v219_v55 }
 0x399   :  { %v1021_v50 = vpop.eup %1020 }
 0x39a   :  { %v223_v51 = vmul.f32 %v1021_v50, %v1007_v15  ;;  %v445_v52 = vpop.xlane.xlu0 %444  ;;  %v363_v53 = vpop.permute.xlu2 %362 }
 0x39b   :  { %1022 = vrcp.f32 %v445_v52  ;;  %v368_v56 = vsel %vm231_vm9, %v363_v53, 0 }
 0x39c   :  { %v225_v54 = vpack.c.bf16 %v223_v51, %v223_v51  ;;  %1024 = vrcp.f32 %v331_v46 }
 0x39e   :  { %882 = vmatmul.msk.bf16.vlgmr.msrb.gmra.mxu3 %vm154_vm8, %v225_v54 }
 0x39f   :  { %377 = vmatpush.bf16.msrb.mxu3 %v368_v56 }
 0x3a1   :  { %v1023_v57 = vpop.eup %1022 }
 0x3a2   :  { %v451_v58 = vmul.f32 %v1023_v57, %v1241_v19  ;;  %v1025_v61 = vpop.eup %1024 }
 0x3a3   :  { %v337_v62 = vmul.f32 %v1025_v61, %v1234_v12 }
 0x3a4   :  { %v453_v60 = vpack.c.bf16 %v451_v58, %v451_v58 }
 0x3a5   :  { %v339_v63 = vpack.c.bf16 %v337_v62, %v337_v62  ;;  %v991_v62 = vld [vmem:[%s1370_s3] ss:$0 sm:$0xff] }
 0x3a6   :  { %889 = vmatmul.msk.bf16.vlgmr.msrb.gmra.mxu2 %vm154_vm8, %v453_v60 }
 0x3aa   :  { %v559_v6 = vpop.xlane.xlu0 %558 }
 0x3ae   :  { %885 = vmatmul.msk.bf16.vlgmr.msra.gmra.mxu3 %vm154_vm8, %v339_v63 }
 0x3b6   :  { %v334_v1 = vpop.xlane.xlu1 %333 }
 0x3b7   :  { %1026 = vrcp.f32 %v334_v1 }
 0x3b8   :  { %1028 = vrcp.f32 %v559_v6 }
 0x3bd   :  { %v1027_v3 = vpop.eup %1026  ;;  %v591_v7 = vpop.permute.xlu0 %590 }
 0x3be   :  { %v338_v4 = vmul.f32 %v1027_v3, %v1013_v31  ;;  %v596_v11 = vsel %vm231_vm9, %v591_v7, 0  ;;  %v1029_v13 = vpop.eup %1028 }
 0x3bf   :  { %v565_v15 = vmul.f32 %v1029_v13, %v1246_v26 }
 0x3c0   :  { %v340_v5 = vpack.c.bf16 %v338_v4, %v338_v4 }
 0x3c1   :  { %v567_v20 = vpack.c.bf16 %v565_v15, %v565_v15 }
 0x3c2   :  { %886 = vmatmul.msk.bf16.vlgmr.msrb.gmra.mxu3 %vm154_vm8, %v340_v5 }
 0x3ce   :  { %v477_v8 = vpop.permute.xlu1 %476 }
 0x3cf   :  { %v482_v9 = vsel %vm231_vm9, %v477_v8, 0 }
 0x3d0   :  { %491 = vmatpush.bf16.msra.mxu3 %v482_v9 }
 0x3d3   :  { %v448_v12 = vpop.xlane.xlu2 %447 }
 0x3d4   :  { %605 = vmatpush.bf16.msrb.mxu3 %v596_v11  ;;  %1030 = vrcp.f32 %v448_v12 }
 0x3da   :  { %v1031_v14 = vpop.eup %1030 }
 0x3db   :  { %v452_v16 = vmul.f32 %v1031_v14, %v1256_v36  ;;  %v570_v17 = vpop.permute.xlu2 %569 }
 0x3dc   :  { %v575_v18 = vsel %vm231_vm9, %v570_v17, 0 }
 0x3dd   :  { %v454_v19 = vpack.c.bf16 %v452_v16, %v452_v16  ;;  %584 = vmatpush.bf16.msra.mxu2 %v575_v18  ;;  %v950_v18 = vld [vmem:[%s1375_s8 + $0x8] sm:$0xff] }
 0x3de   :  { %769 = vmatpush.bf16.msra.mxu1 %v950_v18 }
 0x3df   :  { %890 = vmatmul.msk.bf16.vlgmr.msra.gmra.mxu3 %vm154_vm8, %v454_v19 }
 0x3e0   :  { %893 = vmatmul.msk.bf16.vlgmr.msra.gmra.mxu2 %vm154_vm8, %v567_v20 }
 0x3f9   :  { %v562_v21 = vpop.xlane.xlu1 %561 }
 0x3fa   :  { %1032 = vrcp.f32 %v562_v21  ;;  %v949_v21 = vld [vmem:[%s1375_s8] sm:$0xff] }
 0x3fb   :  { %770 = vmatpush.bf16.msra.mxu1 %v949_v21 }
 0x400   :  { %v1033_v22 = vpop.eup %1032 }
 0x401   :  { %v566_v23 = vmul.f32 %v1033_v22, %v1019_v44  ;;  %v948_v44 = vld [vmem:[%s1371_s2 + $0x8] sm:$0xff] }
 0x402   :  { %v244_v24 = vpop.f32.mrf.mxu3  ;;  %673 = vmatpush.bf16.msra.mxu0 %v948_v44 }
 0x403   :  { %v568_v25 = vpack.c.bf16 %v566_v23, %v566_v23  ;;  %v958_v23 = vld [vmem:[%s1376_s10 + $0x38] sm:$0xff] }
 0x404   :  { %848 = vmatpush.bf16.msrb.mxu2 %v958_v23 }
 0x405   :  { %894 = vmatmul.msk.bf16.vlgmr.msrb.gmra.mxu3 %vm154_vm8, %v568_v25 }
 0x406   :  { %674 = vmatpush.bf16.msra.mxu0 %v947_v45  ;;  %v993_v45 = vld [vmem:[%s1373_s7] ss:$0 sm:$0xff] }
 0x40a   :  { %v246_v26 = vpop.f32.mrf.mxu3 }
 0x40b   :  { %v957_v26 = vld [vmem:[%s1376_s10 + $0x30] sm:$0xff] }
 0x40c   :  { %849 = vmatpush.bf16.msrb.mxu2 %v957_v26 }
 0x421   :  { %v265_v27 = vpop.f32.mrf.mxu3 }
 0x429   :  { %v267_v28 = vpop.f32.mrf.mxu3  ;;  %v472_v29 = vpop.f32.mrf.mxu2 }
 0x431   :  { %v358_v30 = vpop.f32.mrf.mxu3  ;;  %v474_v31 = vpop.f32.mrf.mxu2 }
 0x439   :  { %v360_v32 = vpop.f32.mrf.mxu3 }
 0x445   :  { %v379_v33 = vpop.f32.mrf.mxu3 }
 0x446   :  { %v974_v34 = vpack.i.bf16 %v379_v33, %v358_v30  ;;  %v956_v30 = vld [vmem:[%s1376_s10 + $0x28] sm:$0xff] }
 0x447   :  { %850 = vmatpush.bf16.msrb.mxu2 %v956_v30 }
 0x448   :  { %975 = vrot.lane.b32.xlu2 %v974_v34, %s1050_s22 }
 0x44d   :  { %v381_v35 = vpop.f32.mrf.mxu3 }
 0x462   :  { %v493_v36 = vpop.f32.mrf.mxu3 }
 0x463   :  { %v979_v37 = vpack.i.bf16 %v493_v36, %v472_v29  ;;  %v586_v38 = vpop.f32.mrf.mxu2 }
 0x465   :  { %980 = vrot.lane.b32.xlu2 %v979_v37, %s1051_s23 }
 0x46a   :  { %v495_v39 = vpop.f32.mrf.mxu3 }
 0x46b   :  { %v588_v40 = vpop.f32.mrf.mxu2 }
 0x488   :  { %v607_v41 = vpop.f32.mrf.mxu3 }
 0x489   :  { %v984_v42 = vpack.i.bf16 %v607_v41, %v586_v38  ;;  %v992_v41 = vld [vmem:[%s1372_s6] ss:$0 sm:$0xff] }
 0x48b   :  { %985 = vrot.lane.b32.xlu1 %v984_v42, %s1052_s24 }
 0x490   :  { %v609_v43 = vpop.f32.mrf.mxu3 }
 0x4a2   :  { %v976_v59 = vpop.permute.xlu2 %975 }
 0x4a3   :  { %v978_v47 = vunpack.i.h.bf16 %v976_v59  ;;  %v977_v48 = vunpack.i.l.bf16 %v976_v59 }
 0x4a5   :  { %v636_v51 = vsel %vm154_vm8, %v265_v27, %v978_v47  ;;  %v635_v52 = vsel %vm154_vm8, %v244_v24, %v977_v48 }
 0x4bf   :  { %v981_v46 = vpop.permute.xlu2 %980 }
 0x4c0   :  { %v983_v49 = vunpack.i.h.bf16 %v981_v46  ;;  %v982_v55 = vunpack.i.l.bf16 %v981_v46 }
 0x4c2   :  { %v638_v56 = vsel %vm637_vm11, %v635_v52, %v982_v55  ;;  %v639_v57 = vsel %vm637_vm11, %v636_v51, %v983_v49  ;;  %v953_v51 = vld [vmem:[%s1376_s10 + $0x10] sm:$0xff]  ;;  %v952_v52 = vld [vmem:[%s1376_s10 + $0x8] sm:$0xff] }
 0x4fd   :  { %v986_v50 = vpop.permute.xlu1 %985 }
 0x4fe   :  { %v988_v53 = vunpack.i.h.bf16 %v986_v50  ;;  %v987_v54 = vunpack.i.l.bf16 %v986_v50  ;;  %v954_v50 = vld [vmem:[%s1376_s10 + $0x18] sm:$0xff] }
 0x500   :  { %v641_v58 = vsel %vm640_vm12, %v638_v56, %v987_v54  ;;  %v642_v60 = vsel %vm640_vm12, %v639_v57, %v988_v53  ;;  %v951_v53 = vld [vmem:[%s1376_s10] sm:$0xff] }
 0x501   :  { %v643_v61 = vpack.c.bf16 %v642_v60, %v641_v58  ;;  %v994_v56 = vld [vmem:[%s1374_s9] ss:$0 sm:$0xff] }
 0x503   :  { %903 = vmatmul.msk.bf16.vlgmr.msra.gmra.mxu0 %vm46_vm0, %v643_v61 }
 0x580   :  { %v676_v63 = vpop.f32.mrf.mxu0 }
 0x581   :  { %v677_v1 = vadd.f32 %v991_v62, %v676_v63 }
 0x583   :  { %v1296_v3 = vadd.f32 %v677_v1, %v1121_v0  ;;  %v995_v1 = vld [vmem:[%s1377_s11] ss:$0 sm:$0xff] }
 0x585   :  { %v685_v4 = vsel %vm46_vm0, %v1296_v3, 0.0 }
 0x586   :  { %686 = vadd.xlane.f32.xlu2 %v685_v4 }
 0x588   :  { %v678_v5 = vpop.f32.mrf.mxu0 }
 0x589   :  { %v679_v6 = vadd.f32 %v991_v62, %v678_v5 }
 0x58b   :  { %v1301_v7 = vadd.f32 %v679_v6, %v1128_v2 }
 0x58d   :  { %v688_v8 = vsel %vm46_vm0, %v1301_v7, 0.0 }
 0x58e   :  { %689 = vadd.xlane.f32.xlu0 %v688_v8 }
 0x5f9   :  { %v687_v9 = vpop.xlane.xlu2 %686 }
 0x5fa   :  { %v691_v11 = vmul.f32 %v687_v9, %v1132_v10 }
 0x5fc   :  { %v693_v12 = vsub.f32 %v1296_v3, %v691_v11 }
 0x5fe   :  { %v695_v0 = vmul.f32 %v693_v12, %v693_v12 }
 0x600   :  { %v697_v13 = vsel %vm46_vm0, %v695_v0, 0.0 }
 0x601   :  { %v690_v14 = vpop.xlane.xlu0 %689  ;;  %698 = vadd.xlane.f32.xlu1 %v697_v13 }
 0x602   :  { %v692_v15 = vmul.f32 %v690_v14, %v1132_v10 }
 0x604   :  { %v694_v16 = vsub.f32 %v1301_v7, %v692_v15 }
 0x606   :  { %v696_v2 = vmul.f32 %v694_v16, %v694_v16 }
 0x608   :  { %v700_v17 = vsel %vm46_vm0, %v696_v2, 0.0 }
 0x609   :  { %701 = vadd.xlane.f32.xlu2 %v700_v17 }
 0x674   :  { %v699_v19 = vpop.xlane.xlu1 %698 }
 0x675   :  { %v703_v20 = vmul.f32 %v699_v19, %v1132_v10 }
 0x677   :  { %v705_v22 = vadd.f32 1e-05, %v703_v20 }
 0x679   :  { %1034 = vrsqrt.f32 %v705_v22  ;;  %vm713_vm14 = vweird.f32 %v705_v22 }
 0x67c   :  { %v702_v24 = vpop.xlane.xlu2 %701 }
 0x67d   :  { %v704_v25 = vmul.f32 %v702_v24, %v1132_v10  ;;  %v955_v10 = vld [vmem:[%s1376_s10 + $0x20] sm:$0xff] }
 0x67e   :  { %851 = vmatpush.bf16.msrb.mxu2 %v955_v10 }
 0x67f   :  { %v1035_v27 = vpop.eup %1034  ;;  %v706_v28 = vadd.f32 1e-05, %v704_v25 }
 0x680   :  { %v708_v29 = vmul.f32 %v1035_v27, %v705_v22  ;;  %vm714_vm13 = vweird.f32 %v1035_v27 }
 0x681   :  { %1036 = vrsqrt.f32 %v706_v28  ;;  %vm715_vm15 = vmor %vm713_vm14, %vm714_vm13  ;;  %vm723_vm2 = vweird.f32 %v706_v28 }
 0x682   :  { %v709_v31 = vmul.f32 %v1035_v27, %v708_v29  ;;  %852 = vmatpush.bf16.msrb.mxu2 %v954_v50 }
 0x684   :  { %v710_v32 = vmul.f32 0.5, %v709_v31 }
 0x686   :  { %v711_v33 = vsub.f32 1.5, %v710_v32  ;;  %853 = vmatpush.bf16.msrb.mxu2 %v953_v51 }
 0x687   :  { %v1037_v34 = vpop.eup %1036 }
 0x688   :  { %v712_v35 = vmul.f32 %v1035_v27, %v711_v33  ;;  %v718_v36 = vmul.f32 %v1037_v34, %v706_v28  ;;  %vm724_vm1 = vweird.f32 %v1037_v34 }
 0x689   :  { %vm725_vm3 = vmor %vm723_vm2, %vm724_vm1 }
 0x68a   :  { %v719_v37 = vmul.f32 %v1037_v34, %v718_v36  ;;  %v716_v38 = vsel %vm715_vm15, %v1035_v27, %v712_v35  ;;  %854 = vmatpush.bf16.msrb.mxu2 %v952_v52 }
 0x68b   :  { %v727_v42 = vmul.f32 %v716_v38, %v693_v12 }
 0x68c   :  { %v720_v39 = vmul.f32 0.5, %v719_v37 }
 0x68d   :  { %v732_v59 = vmul.f32 %v992_v41, %v727_v42 }
 0x68e   :  { %v721_v40 = vsub.f32 1.5, %v720_v39  ;;  %855 = vmatpush.bf16.msrb.mxu2 %v951_v53 }
 0x68f   :  { %v737_v48 = vadd.f32 %v993_v45, %v732_v59 }
 0x690   :  { %v722_v43 = vmul.f32 %v1037_v34, %v721_v40 }
 0x692   :  { %v726_v44 = vsel %vm725_vm3, %v1037_v34, %v722_v43 }
 0x693   :  { %v728_v46 = vmul.f32 %v726_v44, %v694_v16 }
 0x695   :  { %v733_v47 = vmul.f32 %v992_v41, %v728_v46 }
 0x697   :  { %v738_v49 = vadd.f32 %v993_v45, %v733_v47 }
 0x699   :  { %v739_v55 = vpack.c.bf16 %v738_v49, %v737_v48 }
 0x69b   :  { %912 = vmatmul.msk.bf16.vlgmr.msra.gmra.mxu1 %vm46_vm0, %v739_v55 }
 0x718   :  { %v772_v54 = vpop.f32.mrf.mxu1 }
 0x719   :  { %v773_v57 = vadd.f32 %v994_v56, %v772_v54 }
 0x71b   :  { %v777_v61 = vmax.f32 %v773_v57, 0.0 }
 0x720   :  { %v774_v58 = vpop.f32.mrf.mxu1 }
 0x721   :  { %v775_v60 = vadd.f32 %v994_v56, %v774_v58 }
 0x723   :  { %v778_v62 = vmax.f32 %v775_v60, 0.0 }
 0x725   :  { %v779_v63 = vpack.c.bf16 %v778_v62, %v777_v61 }
 0x727   :  { %856 = vmatmul.bf16.vlgmr.msrb.gmra.mxu2 %v779_v63 }
 0x7aa   :  { %v857_v4 = vpop.f32.mrf.mxu2 }
 0x7ab   :  { %v858_v5 = vadd.f32 %v995_v1, %v857_v4 }
 0x7ad   :  { %v862_v6 = vadd.f32 %v858_v5, %v1296_v3 }
 0x7af   :  { %864 = vst.msk [vmem:[%s1378_s12] sm:$0xff] %vm46_vm0, %v862_v6 }
 0x7b2   :  { %v859_v8 = vpop.f32.mrf.mxu2 }
 0x7b3   :  { %v860_v9 = vadd.f32 %v995_v1, %v859_v8 }
 0x7b5   :  { %v863_v11 = vadd.f32 %v860_v9, %v1301_v7 }
 0x7b7   :  { %865 = vst.msk [vmem:[%s1378_s12 + $0x8] sm:$0xff] %vm46_vm0, %v863_v11 }

</bundles_post_ra>
